<compile_context>
chip_gen: v7x
topology: tpu7x:2x2x1
jax: 0.10.0
libtpu: 0.0.40
codegen_flags: <defaults>
</compile_context>

<pallas_src>
import functools
import math

import jax
import jax.numpy as jnp
from jax.experimental import pallas as pl
from jax.experimental.pallas import tpu as pltpu


# ----------------------------------------------------------------------------
# Tiling helpers
# ----------------------------------------------------------------------------
def _row_tile(m, target=256):
    # second-to-last block dim: full dim if small, otherwise a multiple of 8
    return m if m <= target else target


def _col_tile(n, target=1024):
    # last block dim: full dim if small, otherwise a multiple of 128
    return n if n <= target else target


# ----------------------------------------------------------------------------
# Pallas kernels
# ----------------------------------------------------------------------------
def _matmul_kernel(x_ref, w_ref, o_ref):
    acc = jnp.dot(x_ref[...].astype(jnp.bfloat16),
                  w_ref[...].astype(jnp.bfloat16),
                  preferred_element_type=jnp.float32)
    o_ref[...] = acc.astype(o_ref.dtype)


def _proj_add_ln_kernel(a_ref, w_ref, r_ref, g_ref, b_ref, o_ref, *, eps):
    # LayerNorm(residual + attn_heads @ Wo)
    h = jnp.dot(a_ref[...].astype(jnp.bfloat16),
                w_ref[...].astype(jnp.bfloat16),
                preferred_element_type=jnp.float32) + r_ref[...]
    mean = jnp.mean(h, axis=-1, keepdims=True)
    var = jnp.mean((h - mean) * (h - mean), axis=-1, keepdims=True)
    o_ref[...] = ((h - mean) * jax.lax.rsqrt(var + eps)) * g_ref[...] + b_ref[...]


def _ffn_add_ln_kernel(x_ref, w1_ref, b1_ref, w2_ref, b2_ref, g_ref, bt_ref,
                       o_ref, *, eps):
    # LayerNorm(x + W2 @ relu(W1 @ x + b1) + b2)
    x = x_ref[...]
    h = jnp.dot(x.astype(jnp.bfloat16), w1_ref[...].astype(jnp.bfloat16),
                preferred_element_type=jnp.float32) + b1_ref[...]
    h = jnp.maximum(h, 0.0)                                  # ReLU
    y = jnp.dot(h.astype(jnp.bfloat16), w2_ref[...].astype(jnp.bfloat16),
                preferred_element_type=jnp.float32) + b2_ref[...]
    r = x + y
    mean = jnp.mean(r, axis=-1, keepdims=True)
    var = jnp.mean((r - mean) * (r - mean), axis=-1, keepdims=True)
    o_ref[...] = ((r - mean) * jax.lax.rsqrt(var + eps)) * g_ref[...] + bt_ref[...]


def _mha_core(q, k, v, allowed, scale):
    # q/k: (H, Sq|Sk, d_k) bf16,  v: (H, Sk, d_v) bf16,  allowed: bool (Sq, Sk) or None
    s = jnp.einsum("hqd,hkd->hqk", q, k,
                   preferred_element_type=jnp.float32) * scale
    if allowed is not None:
        s = jnp.where(allowed[None, :, :], s, -1e30)          # finite -> no NaN rows
    m = jnp.max(s, axis=-1, keepdims=True)
    p = jnp.exp(s - m)
    p = p * pl.reciprocal(jnp.sum(p, axis=-1, keepdims=True), approx=True)
    out = jnp.einsum("hqk,hkd->hqd", p.astype(jnp.bfloat16), v,
                     preferred_element_type=jnp.float32)      # (H, Sq, d_v)
    # lane-dense head merge: (Sq, H*d_v), head-major order matches torch reshape
    return jnp.concatenate([out[h] for h in range(out.shape[0])], axis=-1)


def _causal_allowed(sq, sk):
    qi = jax.lax.broadcasted_iota(jnp.int32, (sq, sk), 0)
    ki = jax.lax.broadcasted_iota(jnp.int32, (sq, sk), 1)
    return ki <= qi


def _mha_kernel(q_ref, k_ref, v_ref, o_ref, *, scale, causal):
    q = q_ref[0].astype(jnp.bfloat16)
    k = k_ref[0].astype(jnp.bfloat16)
    v = v_ref[0].astype(jnp.bfloat16)
    allowed = _causal_allowed(q.shape[1], k.shape[1]) if causal else None
    o_ref[0] = _mha_core(q, k, v, allowed, scale).astype(o_ref.dtype)


def _mha_mask_kernel(q_ref, k_ref, v_ref, m_ref, o_ref, *, scale, causal):
    q = q_ref[0].astype(jnp.bfloat16)
    k = k_ref[0].astype(jnp.bfloat16)
    v = v_ref[0].astype(jnp.bfloat16)
    allowed = m_ref[0] > 0.5                                   # (Sq, Sk) bool
    if causal:
        allowed = allowed & _causal_allowed(q.shape[1], k.shape[1])
    o_ref[0] = _mha_core(q, k, v, allowed, scale).astype(o_ref.dtype)


# ----------------------------------------------------------------------------
# pallas_call wrappers
# ----------------------------------------------------------------------------
def matmul(x2d, w, *, tm=256, tn=1024, out_dtype=jnp.float32):
    """x2d: (M, K) @ w: (K, N) -> (M, N), tiled over M and N."""
    M, K = x2d.shape
    N = w.shape[1]
    tm = _row_tile(M, tm)
    tn = _col_tile(N, tn)
    return pl.pallas_call(
        _matmul_kernel,
        out_shape=jax.ShapeDtypeStruct((M, N), out_dtype),
        grid=(pl.cdiv(M, tm), pl.cdiv(N, tn)),
        in_specs=[pl.BlockSpec((tm, K), lambda i, j: (i, 0)),
                  pl.BlockSpec((K, tn), lambda i, j: (0, j))],
        out_specs=pl.BlockSpec((tm, tn), lambda i, j: (i, j)),
        compiler_params=pltpu.CompilerParams(
            dimension_semantics=("parallel", "parallel")),
    )(x2d, w)


def proj_add_layer_norm(attn2d, wo, res2d, gamma, beta, eps=1e-5):
    """LayerNorm(res + attn2d @ wo) over last dim.  attn2d: (M, H*dv)."""
    M, Hd = attn2d.shape
    D = wo.shape[1]
    tm = _row_tile(M)
    return pl.pallas_call(
        functools.partial(_proj_add_ln_kernel, eps=eps),
        out_shape=jax.ShapeDtypeStruct((M, D), jnp.float32),
        grid=(pl.cdiv(M, tm),),
        in_specs=[pl.BlockSpec((tm, Hd), lambda i: (i, 0)),
                  pl.BlockSpec((Hd, D), lambda i: (0, 0)),
                  pl.BlockSpec((tm, D), lambda i: (i, 0)),
                  pl.BlockSpec((1, D), lambda i: (0, 0)),
                  pl.BlockSpec((1, D), lambda i: (0, 0))],
        out_specs=pl.BlockSpec((tm, D), lambda i: (i, 0)),
        compiler_params=pltpu.CompilerParams(dimension_semantics=("parallel",)),
    )(attn2d, wo, res2d, gamma.reshape(1, D), beta.reshape(1, D))


def ffn_add_layer_norm(x2d, w1, b1, w2, b2, gamma, beta, eps=1e-5):
    """LayerNorm(x + FFN(x)) over last dim.  x2d: (M, D)."""
    M, D = x2d.shape
    F = w1.shape[1]
    tm = _row_tile(M)
    return pl.pallas_call(
        functools.partial(_ffn_add_ln_kernel, eps=eps),
        out_shape=jax.ShapeDtypeStruct((M, D), jnp.float32),
        grid=(pl.cdiv(M, tm),),
        in_specs=[pl.BlockSpec((tm, D), lambda i: (i, 0)),
                  pl.BlockSpec((D, F), lambda i: (0, 0)),
                  pl.BlockSpec((1, F), lambda i: (0, 0)),
                  pl.BlockSpec((F, D), lambda i: (0, 0)),
                  pl.BlockSpec((1, D), lambda i: (0, 0)),
                  pl.BlockSpec((1, D), lambda i: (0, 0)),
                  pl.BlockSpec((1, D), lambda i: (0, 0))],
        out_specs=pl.BlockSpec((tm, D), lambda i: (i, 0)),
        compiler_params=pltpu.CompilerParams(dimension_semantics=("parallel",)),
    )(x2d, w1, b1.reshape(1, F), w2, b2.reshape(1, D),
      gamma.reshape(1, D), beta.reshape(1, D))


def multi_head_attention(p, q_in, kv_in, mask, causal, cfg):
    """Returns merged attention heads (B, Sq, H*d_v) in bf16; the output
    projection is fused into the following proj_add_layer_norm call."""
    B, Sq, D = q_in.shape
    Sk = kv_in.shape[1]
    H, dk, dv = cfg["n_heads"], cfg["d_k"], cfg["d_v"]

    if q_in is kv_in:
        qkv = matmul(q_in.reshape(B * Sq, D), p["wqkv"],
                     out_dtype=jnp.bfloat16)                  # (B*Sq, H*(2dk+dv))
        q = qkv[:, : H * dk]
        k = qkv[:, H * dk: 2 * H * dk]
        v = qkv[:, 2 * H * dk:]
    else:
        q = matmul(q_in.reshape(B * Sq, D), p["wq"], out_dtype=jnp.bfloat16)
        kv = matmul(kv_in.reshape(B * Sk, D), p["wkv"], out_dtype=jnp.bfloat16)
        k = kv[:, : H * dk]
        v = kv[:, H * dk:]

    q = q.reshape(B, Sq, H, dk).transpose(0, 2, 1, 3)         # (B, H, Sq, dk)
    k = k.reshape(B, Sk, H, dk).transpose(0, 2, 1, 3)
    v = v.reshape(B, Sk, H, dv).transpose(0, 2, 1, 3)

    scale = 1.0 / math.sqrt(float(dk))
    out_shape = jax.ShapeDtypeStruct((B, Sq, H * dv), jnp.bfloat16)
    cparams = pltpu.CompilerParams(dimension_semantics=("parallel",))

    if mask is None:
        return pl.pallas_call(
            functools.partial(_mha_kernel, scale=scale, causal=causal),
            out_shape=out_shape,
            grid=(B,),
            in_specs=[pl.BlockSpec((1, H, Sq, dk), lambda b: (b, 0, 0, 0)),
                      pl.BlockSpec((1, H, Sk, dk), lambda b: (b, 0, 0, 0)),
                      pl.BlockSpec((1, H, Sk, dv), lambda b: (b, 0, 0, 0))],
            out_specs=pl.BlockSpec((1, Sq, H * dv), lambda b: (b, 0, 0)),
            compiler_params=cparams,
        )(q, k, v)

    m = jnp.broadcast_to(mask, (B, Sq, Sk)).astype(jnp.float32)
    return pl.pallas_call(
        functools.partial(_mha_mask_kernel, scale=scale, causal=causal),
        out_shape=out_shape,
        grid=(B,),
        in_specs=[pl.BlockSpec((1, H, Sq, dk), lambda b: (b, 0, 0, 0)),
                  pl.BlockSpec((1, H, Sk, dk), lambda b: (b, 0, 0, 0)),
                  pl.BlockSpec((1, H, Sk, dv), lambda b: (b, 0, 0, 0)),
                  pl.BlockSpec((1, Sq, Sk), lambda b: (b, 0, 0))],
        out_specs=pl.BlockSpec((1, Sq, H * dv), lambda b: (b, 0, 0)),
        compiler_params=cparams,
    )(q, k, v, m)


# ----------------------------------------------------------------------------
# Model composition
# ----------------------------------------------------------------------------
def encoder_block(p, x, pad_mask, cfg):
    B, S, D = x.shape
    attn = multi_head_attention(p["mha"], x, x, pad_mask, False, cfg)
    h = proj_add_layer_norm(attn.reshape(B * S, -1), p["mha"]["wo"],
                            x.reshape(B * S, D), p["ln1_g"], p["ln1_b"])
    out = ffn_add_layer_norm(h, p["ffn_w1"], p["ffn_b1"],
                             p["ffn_w2"], p["ffn_b2"], p["ln2_g"], p["ln2_b"])
    return out.reshape(B, S, D)


def decoder_block(p, x, context, decoder_mask, encoder_mask, cfg):
    B, S, D = x.shape
    self_attn = multi_head_attention(p["mha_self"], x, x, decoder_mask, True, cfg)
    norm1 = proj_add_layer_norm(self_attn.reshape(B * S, -1), p["mha_self"]["wo"],
                                x.reshape(B * S, D), p["ln1_g"], p["ln1_b"])
    norm1_3d = norm1.reshape(B, S, D)
    cross = multi_head_attention(p["mha_cross"], norm1_3d, context,
                                 encoder_mask, False, cfg)
    norm2 = proj_add_layer_norm(cross.reshape(B * S, -1), p["mha_cross"]["wo"],
                                norm1, p["ln2_g"], p["ln2_b"])
    out = ffn_add_layer_norm(norm2, p["ffn_w1"], p["ffn_b1"],
                             p["ffn_w2"], p["ffn_b2"], p["ln3_g"], p["ln3_b"])
    return out.reshape(B, S, D)


def positional_encoding(d_model, max_length):
    pos = jnp.arange(max_length, dtype=jnp.float32)[:, None]
    i = jnp.arange(d_model, dtype=jnp.float32)[None, :]
    angle = pos / jnp.power(10000.0, (2.0 * jnp.floor(i / 2.0)) / d_model)
    pe = jnp.where((jnp.arange(d_model) % 2) == 0, jnp.sin(angle), jnp.cos(angle))
    return pe.astype(jnp.float32)                             # (max_length, d_model)


def embed(params, token_ids, cfg):
    # Embedding gather + positional encoding (memory-bound glue, kept in XLA).
    S = token_ids.shape[-1]
    emb = jnp.take(params["emb"], token_ids, axis=0)          # (B, S, d_model)
    return emb + params["pos_enc"][:S]


def transformer_forward(params, encoder_inputs, decoder_inputs,
                        encoder_mask=None, decoder_mask=None, cfg=None):
    B, S_dec = decoder_inputs.shape

    enc = embed(params, encoder_inputs, cfg)
    for blk in params["encoder"]:
        enc = encoder_block(blk, enc, encoder_mask, cfg)

    dec = embed(params, decoder_inputs, cfg)
    for blk in params["decoder"]:
        # causal mask is generated inside the attention kernel (no HBM mask tensor)
        dec = decoder_block(blk, dec, enc, decoder_mask, encoder_mask, cfg)

    # Tied output projection: weight pre-transposed once at init (no per-call .T).
    D = cfg["d_model"]
    logits = matmul(dec.reshape(B * S_dec, D), params["emb_out"],
                    out_dtype=jnp.float32)
    return logits.reshape(B, S_dec, cfg["vocab_size"])


# ----------------------------------------------------------------------------
# Deterministic parameter initialization
# ----------------------------------------------------------------------------
def _normal(key, shape, scale=0.02):
    return (scale * jax.random.normal(key, shape)).astype(jnp.float32)


def init_mha(key, cfg):
    d, dk, dv, H = cfg["d_model"], cfg["d_k"], cfg["d_v"], cfg["n_heads"]
    ks = jax.random.split(key, 4)
    wq = _normal(ks[0], (d, H * dk))
    wk = _normal(ks[1], (d, H * dk))
    wv = _normal(ks[2], (d, H * dv))
    return {
        # matmul weights stored in bf16 (MXU input dtype) -> half the HBM bytes
        "wq": wq.astype(jnp.bfloat16),
        "wkv": jnp.concatenate([wk, wv], axis=1).astype(jnp.bfloat16),
        "wqkv": jnp.concatenate([wq, wk, wv], axis=1).astype(jnp.bfloat16),
        "wo": _normal(ks[3], (H * dv, d)).astype(jnp.bfloat16),
    }


def init_block(key, cfg, is_decoder):
    d, dff = cfg["d_model"], cfg["d_ff"]
    ks = jax.random.split(key, 6)
    p = {
        "ffn_w1": _normal(ks[0], (d, dff)).astype(jnp.bfloat16),
        "ffn_b1": _normal(ks[1], (dff,)),
        "ffn_w2": _normal(ks[2], (dff, d)).astype(jnp.bfloat16),
        "ffn_b2": _normal(ks[3], (d,)),
        "ln1_g": jnp.ones((d,), jnp.float32), "ln1_b": jnp.zeros((d,), jnp.float32),
        "ln2_g": jnp.ones((d,), jnp.float32), "ln2_b": jnp.zeros((d,), jnp.float32),
    }
    if is_decoder:
        p["mha_self"] = init_mha(ks[4], cfg)
        p["mha_cross"] = init_mha(ks[5], cfg)
        p["ln3_g"] = jnp.ones((d,), jnp.float32)
        p["ln3_b"] = jnp.zeros((d,), jnp.float32)
    else:
        p["mha"] = init_mha(ks[4], cfg)
    return p


def init_params(key, cfg):
    ks = jax.random.split(key, 1 + 2 * cfg["n"])
    emb = _normal(ks[0], (cfg["vocab_size"], cfg["d_model"]))
    return {
        "emb": emb,                                           # f32 for gather + pos-enc
        "emb_out": emb.T.astype(jnp.bfloat16),                # tied, pre-transposed
        "pos_enc": positional_encoding(cfg["d_model"], cfg["max_length"]),
        "encoder": [init_block(ks[1 + i], cfg, False) for i in range(cfg["n"])],
        "decoder": [init_block(ks[1 + cfg["n"] + i], cfg, True)
                    for i in range(cfg["n"])],
    }


# ----------------------------------------------------------------------------
if __name__ == "__main__":
    cfg = {
        "vocab_size": 50,
        "d_model": 32,
        "d_k": 8,
        "d_v": 8,
        "n_heads": 4,
        "d_ff": 64,
        "n": 2,
        "max_length": 64,
    }

    key = jax.random.PRNGKey(0)
    k_params, k_enc, k_dec = jax.random.split(key, 3)
    params = init_params(k_params, cfg)

    batch, seq_enc, seq_dec = 2, 8, 8
    encoder_inputs = jax.random.randint(k_enc, (batch, seq_enc), 0,
                                        cfg["vocab_size"], dtype=jnp.int32)
    decoder_inputs = jax.random.randint(k_dec, (batch, seq_dec), 0,
                                        cfg["vocab_size"], dtype=jnp.int32)

    logits = transformer_forward(params, encoder_inputs, decoder_inputs,
                                 encoder_mask=None, decoder_mask=None, cfg=cfg)
    logits = jax.block_until_ready(logits)

    assert logits.shape == (batch, seq_dec, cfg["vocab_size"])
    assert logits.dtype == jnp.float32
    assert bool(jnp.all(jnp.isfinite(logits)))
    print("KERNEL_OK")
</pallas_src>

<mosaic_0001>
module attributes {stable_mosaic.version = 11 : i64} {
  func.func @_matmul_kernel(%arg0: i32, %arg1: i32, %arg2: memref<16x32xf32, #tpu.memory_space<vmem>>, %arg3: memref<32x96xbf16, #tpu.memory_space<vmem>>, %arg4: memref<16x96xbf16, #tpu.memory_space<vmem>>) attributes {dimension_semantics = [#tpu.dimension_semantics<parallel>, #tpu.dimension_semantics<parallel>], iteration_bounds = array<i64: 1, 1>, scalar_prefetch = 0 : i64, scratch_operands = 0 : i64, tpu.core_type = #tpu.core_type<tc>, window_params = [{transform_indices = @transform_0, window_bounds = array<i64: 16, 32>}, {transform_indices = @transform_1, window_bounds = array<i64: 32, 96>}, {transform_indices = @transform_2, window_bounds = array<i64: 16, 96>}]} {
    %c0 = arith.constant 0 : index
    %c0_0 = arith.constant 0 : index
    %0 = vector.load %arg2[%c0, %c0_0] : memref<16x32xf32, #tpu.memory_space<vmem>>, vector<16x32xf32>
    %1 = arith.truncf %0 : vector<16x32xf32> to vector<16x32xbf16>
    %c0_1 = arith.constant 0 : index
    %c0_2 = arith.constant 0 : index
    %2 = vector.load %arg3[%c0_1, %c0_2] : memref<32x96xbf16, #tpu.memory_space<vmem>>, vector<32x96xbf16>
    %cst = arith.constant dense<0.000000e+00> : vector<16x96xf32>
    %3 = tpu.matmul %1, %2, %cst {dimension_numbers = #tpu.dot_dimension_numbers<[1], [0], [0], [1], [0, 0, 1, 1], [], []>} : vector<16x32xbf16>, vector<32x96xbf16>, vector<16x96xf32> -> vector<16x96xf32>
    %4 = arith.truncf %3 : vector<16x96xf32> to vector<16x96xbf16>
    %c0_3 = arith.constant 0 : index
    %c0_4 = arith.constant 0 : index
    %5 = vector.load %arg4[%c0_3, %c0_4] : memref<16x96xbf16, #tpu.memory_space<vmem>>, vector<16x96xbf16>
    tpu.vector_store %arg4[%c0_3, %c0_4], %4 {strides = array<i32>} : memref<16x96xbf16, #tpu.memory_space<vmem>>, vector<16x96xbf16>,
    return
  }
  func.func @transform_0(%arg0: i32, %arg1: i32) -> (i32, i32) {
    %c0_i32 = arith.constant 0 : i32
    %c0_i32_0 = arith.constant 0 : i32
    return %arg0, %c0_i32 : i32, i32
  }
  func.func @transform_1(%arg0: i32, %arg1: i32) -> (i32, i32) {
    %c0_i32 = arith.constant 0 : i32
    %c0_i32_0 = arith.constant 0 : i32
    return %c0_i32, %arg1 : i32, i32
  }
  func.func @transform_2(%arg0: i32, %arg1: i32) -> (i32, i32) {
    %c0_i32 = arith.constant 0 : i32
    return %arg0, %arg1 : i32, i32
  }
}

</mosaic_0001>

<bundles_post_ra>
// kernel: tpu_custom_call.1
= control target key start
LH: loop header
LB: loop body
LE: loop exit
PB: predicated region body
PF: predicated region fallthrough
CT: control target
= control target key end

     0   :  { %7 = vsyncpa [#allocation3], 0  ;;  %s301_s0 = inlined_call_operand.hbm [shape: f32[16,32], index: 0, kind: input, shape index: {}]   ;;  %s302_s1 = inlined_call_operand.hbm [shape: bf16[32,96], index: 1, kind: input, shape index: {}]   ;;  %s303_s2 = inlined_call_operand.hbm [shape: bf16[16,96], index: 2, kind: output, shape index: {}]  }
   0x1   :  { %8 = vsyncpa [#allocation6], 0 }
   0x2   :  { %9 = vsyncpa [#allocation4], 0  ;;  %s235_s9 = smov [#allocation2]   ;;  %s163_s13 = scalar_lea.hbm %s301_s0, 256 }
   0x3   :  { %s15_s10 = sshll.u32 %s235_s9, 4  ;;  %p164_p0 = scmp.ne.s32.totalorder %s301_s0, %s163_s13  ;;  %s16_s10 = int_to_ptr.vmem [resolvable:$true] %s15_s10 }
   0x4   :  { %p167_p1 = scmp.lt.u32.totalorder %s163_s13, %s301_s0 }
   0x6   :  { %p169_p2 = pnand %p167_p1, %p164_p0 }
   0x8   :  { %172 = shalt.err (!%p169_p2)
}
   0x9   :  { %s173_s18 = scalar_lea.vmem %s16_s10, 256  ;;  %p178_p4 = scmp.lt.s32.totalorder %s16_s10, %s16_s10 }
   0xa   :  { %p174_p3 = scmp.ne.s32.totalorder %s16_s10, %s173_s18  ;;  %p179_p5 = scmp.lt.s32.totalorder %s173_s18, %s173_s18 }
   0xc   :  { %p180_p6 = por %p179_p5, %p178_p4 }
   0xe   :  { %p181_p7 = pnand %p180_p6, %p174_p3 }
  0x10   :  { %184 = shalt.err (!%p181_p7)
}
  0x11   :  { %s236_s19 = smov 128   ;;  %s237_s20 = smov 8  }
  0x12   :  { %21 = dma.hbm_to_vmem [thread:$0]  %s301_s0, 256, %s16_s10, [#allocation3], %s236_s19, %s236_s19, %s237_s20  }
  0x13   :  { %s238_s23 = smov [#allocation5]   ;;  %s185_s27 = scalar_lea.hbm %s302_s1, 256 }
  0x14   :  { %s27_s24 = sshll.u32 %s238_s23, 4  ;;  %p186_p8 = scmp.ne.s32.totalorder %s302_s1, %s185_s27  ;;  %s28_s24 = int_to_ptr.vmem [resolvable:$true] %s27_s24 }
  0x15   :  { %p189_p9 = scmp.lt.u32.totalorder %s185_s27, %s302_s1 }
  0x17   :  { %p191_p10 = pnand %p189_p9, %p186_p8 }
  0x19   :  { %194 = shalt.err (!%p191_p10)
}
  0x1a   :  { %s195_s4 = scalar_lea.vmem %s28_s24, 256  ;;  %p200_p12 = scmp.lt.s32.totalorder %s28_s24, %s28_s24 }
  0x1b   :  { %p196_p11 = scmp.ne.s32.totalorder %s28_s24, %s195_s4  ;;  %p201_p13 = scmp.lt.s32.totalorder %s195_s4, %s195_s4 }
  0x1d   :  { %p202_p0 = por %p201_p13, %p200_p12 }
  0x1f   :  { %p203_p1 = pnand %p202_p0, %p196_p11 }
  0x21   :  { %206 = shalt.err (!%p203_p1)
}
  0x22   :  { %s239_s0 = smov 64   ;;  %s240_s5 = smov 4  }
  0x23   :  { %33 = dma.hbm_to_vmem [thread:$0]  %s302_s1, 256, %s28_s24, [#allocation6], %s239_s0, %s239_s0, %s240_s5  }
  0x24   :  { %229 = dma.done.wait [#allocation3], 256  }
  0x25   :  { %230 = vsyncadd [#allocation3], 4294967040 }
  0x26   :  { %231 = dma.done.wait [#allocation6], 256  }
  0x27   :  { %232 = vsyncadd [#allocation6], 4294967040  ;;  %v241_v0 = vmov 0.0   ;;  %vm242_vm0 = vmmov 0   ;;  %v161_v1 = vld [vmem:[#allocation5] sm:$0xff]   ;;  %v162_v2 = vld [vmem:[#allocation5 + $0x8] sm:$0xff]  }
  0x28   :  { %144 = vmatprep.subr.bf16.mxu0 %v241_v0  ;;  %148 = vmatprep.mubr.msk.bf16.mxu0 %vm242_vm0, %v241_v0  ;;  %v41_v3 = vld [vmem:[#allocation2] sm:$0xff]  ;;  %v42_v4 = vld [vmem:[#allocation2 + $0x8] sm:$0xff]  ;;  %vm60_vm1 = vcmask 261120   ;;  %vm113_vm2 = vcmask 781312   ;;  %s243_s1 = smov [#allocation7]  }
  0x29   :  { %145 = vmatpush3.bf16.msra.mxu0 %v161_v1  ;;  %v43_v5 = vpack.c.bf16 %v42_v4, %v41_v3  ;;  %s121_s8 = sshll.u32 %s243_s1, 4  ;;  %s122_s8 = int_to_ptr.vmem [resolvable:$true] %s121_s8 }
  0x2a   :  { %146 = vmatprep.subr.bf16.mxu0 %v241_v0  ;;  %s207_s9 = scalar_lea.vmem %s122_s8, 128  ;;  %p212_p3 = scmp.lt.s32.totalorder %s122_s8, %s122_s8 }
  0x2b   :  { %p208_p2 = scmp.ne.s32.totalorder %s122_s8, %s207_s9  ;;  %p213_p4 = scmp.lt.s32.totalorder %s207_s9, %s207_s9 }
  0x2d   :  { %147 = vmatpush3.bf16.msra.mxu0 %v162_v2  ;;  %p214_p5 = por %p213_p4, %p212_p3 }
  0x2f   :  { %p215_p6 = pnand %p214_p5, %p208_p2 }
  0x30   :  { %149 = vmatmul.mubr.msk.bf16.vlgmr.msra.gmra.mrb[0].mxu0 %vm60_vm1, %v43_v5 }
 0x103   :  { %v98_v6 = vpop.f32.mrb[0].mxu0 }
 0x104   :  { %v139_v7 = vpack.c.bf16 %v98_v6, %v98_v6  ;;  %v150_v8 = vpop.f32.mrb[1].mxu0 }
 0x105   :  { %v101_v9 = vpop.f32.mrb[2].mxu0 }
 0x106   :  { %v140_v10 = vpack.c.bf16 %v101_v9, %v101_v9  ;;  %v151_v11 = vpop.f32.mrb[3].mxu0  ;;  %114 = vst.msk [vmem:[#allocation7] sm:$0xf] %vm113_vm2, %v139_v7 }
 0x108   :  { %115 = vst.msk [vmem:[#allocation7 + $0x4] sm:$0xf] %vm113_vm2, %v140_v10 }
 0x109   :  { %218 = shalt.err (!%p215_p6)
}
 0x10a   :  { %s219_s12 = scalar_lea.hbm %s303_s2, 128 }
 0x10b   :  { %p220_p7 = scmp.ne.s32.totalorder %s303_s2, %s219_s12  ;;  %p223_p8 = scmp.lt.u32.totalorder %s219_s12, %s303_s2 }
 0x10d   :  { %p225_p9 = pnand %p223_p8, %p220_p7 }
 0x10f   :  { %228 = shalt.err (!%p225_p9)
}
 0x110   :  { %127 = dma.vmem_to_hbm [thread:$0]  %s122_s8, 128, %s303_s2, [#allocation4], %s239_s0, %s239_s0, %s240_s5  }
 0x111   :  { %233 = dma.done.wait [#allocation4], 128  }
 0x112   :  { %234 = vsyncadd [#allocation4], 4294967168 }
 0x113   :  { %131 = vsyncpa [#allocation3], 1 }
 0x114   :  { %132 = vsyncpa [#allocation6], 1 }
 0x115   :  { %133 = vsyncpa [#allocation4], 1 }

</bundles_post_ra>
